<compile_context>
chip_gen: v5e
topology: v5e:2x2
jax: 0.10.0
libtpu: 0.0.40
codegen_flags: <defaults>
</compile_context>

<pallas_src>
import functools

import jax
import jax.numpy as jnp
from jax.experimental import pallas as pl
from jax.experimental.pallas import tpu as pltpu

EPS = 1e-5


def _round_up(x, m):
    return ((x + m - 1) // m) * m


# -------------------- per-generation VMEM / tile configuration ---------------

def _vmem_capacity_bytes():
    try:
        info = pltpu.get_tpu_info()
        for attr in ("vmem_capacity_bytes", "vmem_size_bytes", "vmem_bytes"):
            cap = getattr(info, attr, None)
            if cap:
                return int(cap)
    except Exception:
        pass
    return 64 * 1024 * 1024            # conservative: v7x per-TensorCore VMEM


_VMEM_CAP = _vmem_capacity_bytes()
if _VMEM_CAP >= 100 * 1024 * 1024:     # v5e / v6e: 128 MiB VMEM
    _TM_CAP, _TK_CAP = 1024, 1024
    _VMEM_LIMIT = 96 * 1024 * 1024
else:                                  # v7x: 64 MiB per TC (32 MiB scoped dflt)
    _TM_CAP, _TK_CAP = 512, 512
    _VMEM_LIMIT = 48 * 1024 * 1024


def _pick_tk(kp, cap, target=512):
    """128-multiple divisor of kp (kp itself a multiple of 128) nearest target."""
    best = 128
    d = 128
    while d <= min(kp, cap):
        if kp % d == 0 and abs(d - target) <= abs(best - target):
            best = d
        d += 128
    return best


# ----------------------- fused tiled matmul Pallas kernel --------------------

def _make_matmul_kernel(tk, has_affine, has_residual, has_extra, do_relu):
    """Builds kernel(a, w, [scale, bias], [res], [xa, xw], out, acc_scratch)."""

    def kernel(*refs):
        it = iter(refs)
        a_ref = next(it)
        w_ref = next(it)
        scale_ref = bias_ref = res_ref = xa_ref = xw_ref = None
        if has_affine:
            scale_ref = next(it)
            bias_ref = next(it)
        if has_residual:
            res_ref = next(it)
        if has_extra:
            xa_ref = next(it)
            xw_ref = next(it)
        o_ref = next(it)
        acc_ref = next(it)

        k = pl.program_id(1)
        koff = pl.multiple_of(k * tk, 128)
        prod = jnp.dot(a_ref[...], w_ref[pl.ds(koff, tk), :],
                       preferred_element_type=jnp.float32)

        @pl.when(k == 0)
        def _():
            acc_ref[...] = prod          # direct write: no zero-fill RMW

        @pl.when(k > 0)
        def _():
            acc_ref[...] += prod

        @pl.when(k == pl.num_programs(1) - 1)
        def _():
            r = acc_ref[...]
            if has_extra:                # fused 1x1 shortcut conv
                r = r + jnp.dot(xa_ref[...], xw_ref[...],
                                preferred_element_type=jnp.float32)
            if has_affine:
                r = r * scale_ref[...] + bias_ref[...]
            if do_relu:
                r = jnp.maximum(r, 0.0)
            if has_residual:             # fused identity shortcut
                r = r + res_ref[...].astype(jnp.float32)
            o_ref[...] = r.astype(o_ref.dtype)

    return kernel


def fused_matmul(a, w, *, scale=None, bias=None, residual=None,
                 extra_a=None, extra_w=None, relu=False,
                 out_dtype=jnp.float32):
    """out = [relu]((A @ W [+ XA @ XW]) [* scale + bias]) [+ residual].

    Tiled bf16 MXU matmul, f32 accumulation. W (and XW) stay VMEM-resident for
    the whole call; A is streamed from HBM exactly once.
    """
    M, K = a.shape
    K2, N = w.shape
    assert K == K2
    has_affine = scale is not None
    has_residual = residual is not None
    has_extra = extra_a is not None
    assert (extra_a is None) == (extra_w is None)

    # Lane-dense output: Np a multiple of 128 and the FULL N kept per tile
    # (no N grid axis), so A is never re-streamed per N tile.
    Np = _round_up(N, 128)
    Kp = _round_up(K, 128)
    tk = _pick_tk(Kp, _TK_CAP)           # divisor of Kp -> no extra K padding
    tm = min(_TM_CAP, _round_up(M, 16))
    Mp = _round_up(M, tm)

    a_p = jnp.pad(a.astype(jnp.bfloat16), ((0, Mp - M), (0, Kp - K)))
    w_p = jnp.pad(w.astype(jnp.bfloat16), ((0, Kp - K), (0, Np - N)))

    inputs = [a_p, w_p]
    in_specs = [
        pl.BlockSpec((tm, tk), lambda i, k: (i, k)),     # A: streamed once
        pl.BlockSpec((Kp, Np), lambda i, k: (0, 0)),     # W: fully resident
    ]
    flops = 2 * Mp * Np * Kp
    bytes_accessed = (a_p.size * 2 + w_p.size * 2
                      + Mp * Np * jnp.dtype(out_dtype).itemsize)

    if has_affine:
        s_p = jnp.pad(scale.astype(jnp.float32).reshape(1, N),
                      ((0, 0), (0, Np - N)))
        b_p = jnp.pad(bias.astype(jnp.float32).reshape(1, N),
                      ((0, 0), (0, Np - N)))
        inputs += [s_p, b_p]
        in_specs += [pl.BlockSpec((1, Np), lambda i, k: (0, 0)),
                     pl.BlockSpec((1, Np), lambda i, k: (0, 0))]
        bytes_accessed += 2 * Np * 4
    if has_residual:
        # residual carried in bf16 (halves its HBM read; precision already
        # bounded by the bf16 MXU operands).
        r_p = jnp.pad(residual.astype(jnp.bfloat16), ((0, Mp - M), (0, Np - N)))
        inputs.append(r_p)
        in_specs.append(pl.BlockSpec((tm, Np), lambda i, k: (i, 0)))
        bytes_accessed += Mp * Np * 2
    if has_extra:
        Ce = extra_a.shape[1]
        assert extra_w.shape == (Ce, N)
        Cep = _round_up(Ce, 128)
        xa_p = jnp.pad(extra_a.astype(jnp.bfloat16),
                       ((0, Mp - M), (0, Cep - Ce)))
        xw_p = jnp.pad(extra_w.astype(jnp.bfloat16),
                       ((0, Cep - Ce), (0, Np - N)))
        inputs += [xa_p, xw_p]
        in_specs += [pl.BlockSpec((tm, Cep), lambda i, k: (i, 0)),
                     pl.BlockSpec((Cep, Np), lambda i, k: (0, 0))]
        flops += 2 * Mp * Np * Cep
        bytes_accessed += (Mp * Cep + Cep * Np) * 2

    grid = (Mp // tm, Kp // tk)          # M outer ("parallel"), K reduction

    out = pl.pallas_call(
        _make_matmul_kernel(tk, has_affine, has_residual, has_extra, relu),
        out_shape=jax.ShapeDtypeStruct((Mp, Np), out_dtype),
        grid_spec=pltpu.PrefetchScalarGridSpec(
            num_scalar_prefetch=0,
            grid=grid,
            in_specs=in_specs,
            out_specs=pl.BlockSpec((tm, Np), lambda i, k: (i, 0)),
            scratch_shapes=[pltpu.VMEM((tm, Np), jnp.float32)]),
        compiler_params=pltpu.CompilerParams(
            dimension_semantics=("parallel", "arbitrary"),
            vmem_limit_bytes=_VMEM_LIMIT),
        cost_estimate=pl.CostEstimate(flops=int(flops), transcendentals=0,
                                      bytes_accessed=int(bytes_accessed)),
    )(*inputs)
    return out[:M, :N]


# ------------------------------ JAX glue code -------------------------------

def _im2col_3x3(x_nhwc, stride):
    """3x3 patches, pad=1 -> [N*Ho*Wo, 9*C], column order (ki, kj, c)."""
    # TODO(synk): move the 3x3 im2col into the Pallas kernel (halo DMA + 9
    #             shifted (tm,C)@(C,tn) dots) to avoid the 9x activation
    #             blow-up through HBM.
    N, H, W, C = x_nhwc.shape
    Ho = (H + 2 - 3) // stride + 1
    Wo = (W + 2 - 3) // stride + 1
    xp = jnp.pad(x_nhwc, ((0, 0), (1, 1), (1, 1), (0, 0)))
    cols = []
    for ki in range(3):
        for kj in range(3):
            cols.append(xp[:, ki:ki + (Ho - 1) * stride + 1:stride,
                              kj:kj + (Wo - 1) * stride + 1:stride, :])
    patches = jnp.concatenate(cols, axis=-1)               # [N, Ho, Wo, 9*C]
    return patches.reshape(N * Ho * Wo, 9 * C), Ho, Wo


def _w3x3_to_mat(w):
    # (Cout, Cin, 3, 3) -> (9*Cin, Cout), rows ordered (ki, kj, ci)
    cout, cin = w.shape[0], w.shape[1]
    return jnp.transpose(w, (2, 3, 1, 0)).reshape(9 * cin, cout)


def _bn_scale_bias(gamma, beta, mean, var):
    scale = gamma / jnp.sqrt(var + EPS)
    return scale, beta - mean * scale


@functools.partial(jax.jit, static_argnames=("stride", "equal_in_out"))
def basic_block_forward_nhwc(x, params, stride, equal_in_out):
    """NHWC BasicBlock.forward (eval-mode BN, dropRate == 0, no relayouts)."""
    x = x.astype(jnp.float32)
    N, H, W, Cin = x.shape
    Cout = params["conv1"].shape[0]

    # bn1 + relu1: plain JAX so XLA fuses it into the im2col patch build
    # (conv zero-padding is applied AFTER the activation -> correct).
    s1, b1 = _bn_scale_bias(*params["bn1"])
    act = jnp.maximum(x * s1 + b1, 0.0).astype(jnp.bfloat16)

    # conv1 (3x3, stride) fused with bn2 + relu2 in one Pallas matmul.
    patches1, Ho, Wo = _im2col_3x3(act, stride)
    s2, b2 = _bn_scale_bias(*params["bn2"])
    out = fused_matmul(patches1, _w3x3_to_mat(params["conv1"]),
                       scale=s2, bias=b2, relu=True, out_dtype=jnp.bfloat16)
    out = out.reshape(N, Ho, Wo, Cout)

    # TODO(synk): F.dropout not implemented; dropRate == 0 for this block.

    # conv2 (3x3, stride 1) fused with the shortcut branch in one Pallas matmul.
    patches2, _, _ = _im2col_3x3(out, 1)
    w2 = _w3x3_to_mat(params["conv2"])
    if equal_in_out:
        # identity shortcut on the ORIGINAL x, added in the kernel epilogue.
        y = fused_matmul(patches2, w2, residual=x.reshape(-1, Cin),
                         out_dtype=jnp.float32)
    else:
        # 1x1 strided shortcut conv on the activated x, fused into the SAME
        # matmul as a second operand pair (no XLA concatenate of the patches).
        act_s = act[:, ::stride, ::stride, :].reshape(-1, Cin)
        ws = params["convShortcut"].reshape(Cout, Cin).T            # (Cin, Cout)
        y = fused_matmul(patches2, w2, extra_a=act_s, extra_w=ws,
                         out_dtype=jnp.float32)

    return y.reshape(N, Ho, Wo, Cout)


@functools.partial(jax.jit, static_argnames=("stride", "equal_in_out"))
def basic_block_forward(x_nchw, params, stride, equal_in_out):
    """NCHW wrapper matching the PyTorch module interface.
    (Callers that can use NHWC should call basic_block_forward_nhwc to avoid
    the two HBM relayouts.)"""
    x = jnp.transpose(x_nchw, (0, 2, 3, 1))
    y = basic_block_forward_nhwc(x, params, stride, equal_in_out)
    return jnp.transpose(y, (0, 3, 1, 2))


# ----------------------------- reference (JAX) ------------------------------

def _ref_block(x, params, stride, equal_in_out, compute_dtype=jnp.float32):
    """Pure-JAX reference. compute_dtype=bfloat16 emulates the kernel's bf16
    quantization points (MXU inputs, bf16 intermediate, bf16 residual)."""
    def bn(t, g, b, m, v):
        s = g / jnp.sqrt(v + EPS)
        bb = b - m * s
        return t * s[None, :, None, None] + bb[None, :, None, None]

    def conv(t, w, s, pad):
        return jax.lax.conv_general_dilated(
            t.astype(compute_dtype), w.astype(compute_dtype), (s, s),
            ((pad, pad), (pad, pad)),
            dimension_numbers=("NCHW", "OIHW", "NCHW"),
            preferred_element_type=jnp.float32)

    act = jax.nn.relu(bn(x, *params["bn1"]))
    out = jax.nn.relu(bn(conv(act, params["conv1"], stride, 1), *params["bn2"]))
    out = conv(out, params["conv2"], 1, 1)
    if equal_in_out:
        return x.astype(compute_dtype).astype(jnp.float32) + out
    return conv(act, params["convShortcut"], stride, 0) + out


# --------------------------------- params -----------------------------------

def init_params(key, cin, cout, equal_in_out):
    ks = jax.random.split(key, 12)
    p = {
        "bn1": (1.0 + 0.1 * jax.random.normal(ks[0], (cin,)),
                0.1 * jax.random.normal(ks[1], (cin,)),
                0.1 * jax.random.normal(ks[2], (cin,)),
                0.5 + jnp.abs(jax.random.normal(ks[3], (cin,)))),
        "conv1": 0.2 * jax.random.normal(ks[4], (cout, cin, 3, 3)),
        "bn2": (1.0 + 0.1 * jax.random.normal(ks[5], (cout,)),
                0.1 * jax.random.normal(ks[6], (cout,)),
                0.1 * jax.random.normal(ks[7], (cout,)),
                0.5 + jnp.abs(jax.random.normal(ks[8], (cout,)))),
        "conv2": 0.2 * jax.random.normal(ks[9], (cout, cout, 3, 3)),
    }
    if not equal_in_out:
        p["convShortcut"] = 0.3 * jax.random.normal(ks[10], (cout, cin, 1, 1))
    return jax.tree_util.tree_map(lambda a: a.astype(jnp.float32), p)


# ----------------------------------- main ------------------------------------

if __name__ == "__main__":
    key = jax.random.PRNGKey(0)
    kx, kp1, kp2 = jax.random.split(key, 3)

    x = jax.random.normal(kx, (2, 4, 16, 16), dtype=jnp.float32)

    # Case 1: in_planes != out_planes (4 -> 8), stride 2 (fused 1x1 shortcut).
    params_a = init_params(kp1, 4, 8, equal_in_out=False)
    y_a = jax.block_until_ready(
        basic_block_forward(x, params_a, stride=2, equal_in_out=False))
    assert y_a.shape == (2, 8, 8, 8)
    # fidelity vs a bf16-quantized reference (same quantization points)
    ref_a_bf16 = _ref_block(x, params_a, 2, False, compute_dtype=jnp.bfloat16)
    assert jnp.allclose(y_a, ref_a_bf16, atol=2e-2, rtol=2e-2)
    # semantic check vs the pure-f32 reference (loose: kernel uses bf16 MXU inputs)
    ref_a_f32 = _ref_block(x, params_a, 2, False)
    assert jnp.allclose(y_a, ref_a_f32, atol=1e-1, rtol=1e-1)

    # Case 2: in_planes == out_planes (4 -> 4), stride 1 (identity shortcut).
    params_b = init_params(kp2, 4, 4, equal_in_out=True)
    y_b = jax.block_until_ready(
        basic_block_forward(x, params_b, stride=1, equal_in_out=True))
    assert y_b.shape == (2, 4, 16, 16)
    ref_b_bf16 = _ref_block(x, params_b, 1, True, compute_dtype=jnp.bfloat16)
    assert jnp.allclose(y_b, ref_b_bf16, atol=2e-2, rtol=2e-2)
    ref_b_f32 = _ref_block(x, params_b, 1, True)
    assert jnp.allclose(y_b, ref_b_f32, atol=1e-1, rtol=1e-1)

    print("KERNEL_OK")
</pallas_src>

<mosaic_0001>
module attributes {stable_mosaic.version = 11 : i64} {
  func.func @kernel(%arg0: i32, %arg1: i32, %arg2: memref<128x128xbf16, #tpu.memory_space<vmem>>, %arg3: memref<128x128xbf16, #tpu.memory_space<vmem>>, %arg4: memref<1x128xf32, #tpu.memory_space<vmem>>, %arg5: memref<1x128xf32, #tpu.memory_space<vmem>>, %arg6: memref<128x128xbf16, #tpu.memory_space<vmem>>, %arg7: memref<128x128xf32, #tpu.memory_space<vmem>>) attributes {dimension_semantics = [#tpu.dimension_semantics<parallel>, #tpu.dimension_semantics<arbitrary>], iteration_bounds = array<i64: 1, 1>, scalar_prefetch = 0 : i64, scratch_operands = 1 : i64, tpu.core_type = #tpu.core_type<tc>, window_params = [{transform_indices = @transform_0, window_bounds = array<i64: 128, 128>}, {pipeline_mode = #tpu.pipeline_mode<synchronous>, transform_indices = @transform_1, window_bounds = array<i64: 128, 128>}, {pipeline_mode = #tpu.pipeline_mode<synchronous>, transform_indices = @transform_2, window_bounds = array<i64: 1, 128>}, {pipeline_mode = #tpu.pipeline_mode<synchronous>, transform_indices = @transform_3, window_bounds = array<i64: 1, 128>}, {transform_indices = @transform_4, window_bounds = array<i64: 128, 128>}]} {
    %c128_i32 = arith.constant 128 : i32
    %0 = arith.muli %arg1, %c128_i32 : i32
    %1 = tpu.assume_multiple %0, 128 : i32
    %c0 = arith.constant 0 : index
    %c0_0 = arith.constant 0 : index
    %2 = vector.load %arg2[%c0, %c0_0] : memref<128x128xbf16, #tpu.memory_space<vmem>>, vector<128x128xbf16>
    %3 = arith.index_cast %1 : i32 to index
    %c0_1 = arith.constant 0 : index
    %4 = vector.load %arg3[%3, %c0_1] : memref<128x128xbf16, #tpu.memory_space<vmem>>, vector<128x128xbf16>
    %cst = arith.constant dense<0.000000e+00> : vector<128x128xf32>
    %5 = tpu.matmul %2, %4, %cst {dimension_numbers = #tpu.dot_dimension_numbers<[1], [0], [0], [1], [0, 0, 1, 1], [], []>} : vector<128x128xbf16>, vector<128x128xbf16>, vector<128x128xf32> -> vector<128x128xf32>
    %c0_i32 = arith.constant 0 : i32
    %6 = arith.cmpi eq, %arg1, %c0_i32 : i32
    %7 = arith.extui %6 : i1 to i32
    %c0_i32_2 = arith.constant 0 : i32
    %8 = arith.cmpi ne, %7, %c0_i32_2 : i32
    scf.if %8 {
      %c0_7 = arith.constant 0 : index
      %c0_8 = arith.constant 0 : index
      %15 = vector.load %arg7[%c0_7, %c0_8] : memref<128x128xf32, #tpu.memory_space<vmem>>, vector<128x128xf32>
      tpu.vector_store %arg7[%c0_7, %c0_8], %5 {strides = array<i32>} : memref<128x128xf32, #tpu.memory_space<vmem>>, vector<128x128xf32>,
    } else {
    }
    %c0_i32_3 = arith.constant 0 : i32
    %9 = arith.cmpi sgt, %arg1, %c0_i32_3 : i32
    %10 = arith.extui %9 : i1 to i32
    %c0_i32_4 = arith.constant 0 : i32
    %11 = arith.cmpi ne, %10, %c0_i32_4 : i32
    scf.if %11 {
      %c0_7 = arith.constant 0 : index
      %c0_8 = arith.constant 0 : index
      %15 = vector.load %arg7[%c0_7, %c0_8] : memref<128x128xf32, #tpu.memory_space<vmem>>, vector<128x128xf32>
      %16 = arith.addf %15, %5 : vector<128x128xf32>
      %c0_9 = arith.constant 0 : index
      %c0_10 = arith.constant 0 : index
      %17 = vector.load %arg7[%c0_9, %c0_10] : memref<128x128xf32, #tpu.memory_space<vmem>>, vector<128x128xf32>
      tpu.vector_store %arg7[%c0_9, %c0_10], %16 {strides = array<i32>} : memref<128x128xf32, #tpu.memory_space<vmem>>, vector<128x128xf32>,
    } else {
    }
    %c0_i32_5 = arith.constant 0 : i32
    %12 = arith.cmpi eq, %arg1, %c0_i32_5 : i32
    %13 = arith.extui %12 : i1 to i32
    %c0_i32_6 = arith.constant 0 : i32
    %14 = arith.cmpi ne, %13, %c0_i32_6 : i32
    scf.if %14 {
      %c0_7 = arith.constant 0 : index
      %c0_8 = arith.constant 0 : index
      %15 = vector.load %arg7[%c0_7, %c0_8] : memref<128x128xf32, #tpu.memory_space<vmem>>, vector<128x128xf32>
      %c0_9 = arith.constant 0 : index
      %c0_10 = arith.constant 0 : index
      %16 = vector.load %arg4[%c0_9, %c0_10] : memref<1x128xf32, #tpu.memory_space<vmem>>, vector<1x128xf32>
      %17 = vector.broadcast %16 : vector<1x128xf32> to vector<128x128xf32>
      %18 = arith.mulf %15, %17 : vector<128x128xf32>
      %c0_11 = arith.constant 0 : index
      %c0_12 = arith.constant 0 : index
      %19 = vector.load %arg5[%c0_11, %c0_12] : memref<1x128xf32, #tpu.memory_space<vmem>>, vector<1x128xf32>
      %20 = vector.broadcast %19 : vector<1x128xf32> to vector<128x128xf32>
      %21 = arith.addf %18, %20 : vector<128x128xf32>
      %cst_13 = arith.constant 0.000000e+00 : f32
      %22 = vector.broadcast %cst_13 : f32 to vector<128x128xf32>
      %23 = arith.maximumf %21, %22 : vector<128x128xf32>
      %24 = arith.truncf %23 : vector<128x128xf32> to vector<128x128xbf16>
      %c0_14 = arith.constant 0 : index
      %c0_15 = arith.constant 0 : index
      %25 = vector.load %arg6[%c0_14, %c0_15] : memref<128x128xbf16, #tpu.memory_space<vmem>>, vector<128x128xbf16>
      tpu.vector_store %arg6[%c0_14, %c0_15], %24 {strides = array<i32>} : memref<128x128xbf16, #tpu.memory_space<vmem>>, vector<128x128xbf16>,
    } else {
    }
    return
  }
  func.func @transform_0(%arg0: i32, %arg1: i32) -> (i32, i32) {
    %c0_i32 = arith.constant 0 : i32
    return %arg0, %arg1 : i32, i32
  }
  func.func @transform_1(%arg0: i32, %arg1: i32) -> (i32, i32) {
    %c0_i32 = arith.constant 0 : i32
    %c0_i32_0 = arith.constant 0 : i32
    %c0_i32_1 = arith.constant 0 : i32
    return %c0_i32, %c0_i32_0 : i32, i32
  }
  func.func @transform_2(%arg0: i32, %arg1: i32) -> (i32, i32) {
    %c0_i32 = arith.constant 0 : i32
    %c0_i32_0 = arith.constant 0 : i32
    %c0_i32_1 = arith.constant 0 : i32
    return %c0_i32, %c0_i32_0 : i32, i32
  }
  func.func @transform_3(%arg0: i32, %arg1: i32) -> (i32, i32) {
    %c0_i32 = arith.constant 0 : i32
    %c0_i32_0 = arith.constant 0 : i32
    %c0_i32_1 = arith.constant 0 : i32
    return %c0_i32, %c0_i32_0 : i32, i32
  }
  func.func @transform_4(%arg0: i32, %arg1: i32) -> (i32, i32) {
    %c0_i32 = arith.constant 0 : i32
    %c0_i32_0 = arith.constant 0 : i32
    return %arg0, %c0_i32 : i32, i32
  }
}

module attributes {stable_mosaic.version = 11 : i64} {
  func.func @kernel(%arg0: i32, %arg1: i32, %arg2: memref<128x128xbf16, #tpu.memory_space<vmem>>, %arg3: memref<128x128xbf16, #tpu.memory_space<vmem>>, %arg4: memref<128x128xbf16, #tpu.memory_space<vmem>>, %arg5: memref<128x128xbf16, #tpu.memory_space<vmem>>, %arg6: memref<128x128xf32, #tpu.memory_space<vmem>>, %arg7: memref<128x128xf32, #tpu.memory_space<vmem>>) attributes {dimension_semantics = [#tpu.dimension_semantics<parallel>, #tpu.dimension_semantics<arbitrary>], iteration_bounds = array<i64: 1, 1>, scalar_prefetch = 0 : i64, scratch_operands = 1 : i64, tpu.core_type = #tpu.core_type<tc>, window_params = [{transform_indices = @transform_0, window_bounds = array<i64: 128, 128>}, {pipeline_mode = #tpu.pipeline_mode<synchronous>, transform_indices = @transform_1, window_bounds = array<i64: 128, 128>}, {transform_indices = @transform_2, window_bounds = array<i64: 128, 128>}, {pipeline_mode = #tpu.pipeline_mode<synchronous>, transform_indices = @transform_3, window_bounds = array<i64: 128, 128>}, {transform_indices = @transform_4, window_bounds = array<i64: 128, 128>}]} {
    %c128_i32 = arith.constant 128 : i32
    %0 = arith.muli %arg1, %c128_i32 : i32
    %1 = tpu.assume_multiple %0, 128 : i32
    %c0 = arith.constant 0 : index
    %c0_0 = arith.constant 0 : index
    %2 = vector.load %arg2[%c0, %c0_0] : memref<128x128xbf16, #tpu.memory_space<vmem>>, vector<128x128xbf16>
    %3 = arith.index_cast %1 : i32 to index
    %c0_1 = arith.constant 0 : index
    %4 = vector.load %arg3[%3, %c0_1] : memref<128x128xbf16, #tpu.memory_space<vmem>>, vector<128x128xbf16>
    %cst = arith.constant dense<0.000000e+00> : vector<128x128xf32>
    %5 = tpu.matmul %2, %4, %cst {dimension_numbers = #tpu.dot_dimension_numbers<[1], [0], [0], [1], [0, 0, 1, 1], [], []>} : vector<128x128xbf16>, vector<128x128xbf16>, vector<128x128xf32> -> vector<128x128xf32>
    %c0_i32 = arith.constant 0 : i32
    %6 = arith.cmpi eq, %arg1, %c0_i32 : i32
    %7 = arith.extui %6 : i1 to i32
    %c0_i32_2 = arith.constant 0 : i32
    %8 = arith.cmpi ne, %7, %c0_i32_2 : i32
    scf.if %8 {
      %c0_7 = arith.constant 0 : index
      %c0_8 = arith.constant 0 : index
      %15 = vector.load %arg7[%c0_7, %c0_8] : memref<128x128xf32, #tpu.memory_space<vmem>>, vector<128x128xf32>
      tpu.vector_store %arg7[%c0_7, %c0_8], %5 {strides = array<i32>} : memref<128x128xf32, #tpu.memory_space<vmem>>, vector<128x128xf32>,
    } else {
    }
    %c0_i32_3 = arith.constant 0 : i32
    %9 = arith.cmpi sgt, %arg1, %c0_i32_3 : i32
    %10 = arith.extui %9 : i1 to i32
    %c0_i32_4 = arith.constant 0 : i32
    %11 = arith.cmpi ne, %10, %c0_i32_4 : i32
    scf.if %11 {
      %c0_7 = arith.constant 0 : index
      %c0_8 = arith.constant 0 : index
      %15 = vector.load %arg7[%c0_7, %c0_8] : memref<128x128xf32, #tpu.memory_space<vmem>>, vector<128x128xf32>
      %16 = arith.addf %15, %5 : vector<128x128xf32>
      %c0_9 = arith.constant 0 : index
      %c0_10 = arith.constant 0 : index
      %17 = vector.load %arg7[%c0_9, %c0_10] : memref<128x128xf32, #tpu.memory_space<vmem>>, vector<128x128xf32>
      tpu.vector_store %arg7[%c0_9, %c0_10], %16 {strides = array<i32>} : memref<128x128xf32, #tpu.memory_space<vmem>>, vector<128x128xf32>,
    } else {
    }
    %c0_i32_5 = arith.constant 0 : i32
    %12 = arith.cmpi eq, %arg1, %c0_i32_5 : i32
    %13 = arith.extui %12 : i1 to i32
    %c0_i32_6 = arith.constant 0 : i32
    %14 = arith.cmpi ne, %13, %c0_i32_6 : i32
    scf.if %14 {
      %c0_7 = arith.constant 0 : index
      %c0_8 = arith.constant 0 : index
      %15 = vector.load %arg7[%c0_7, %c0_8] : memref<128x128xf32, #tpu.memory_space<vmem>>, vector<128x128xf32>
      %c0_9 = arith.constant 0 : index
      %c0_10 = arith.constant 0 : index
      %16 = vector.load %arg4[%c0_9, %c0_10] : memref<128x128xbf16, #tpu.memory_space<vmem>>, vector<128x128xbf16>
      %c0_11 = arith.constant 0 : index
      %c0_12 = arith.constant 0 : index
      %17 = vector.load %arg5[%c0_11, %c0_12] : memref<128x128xbf16, #tpu.memory_space<vmem>>, vector<128x128xbf16>
      %cst_13 = arith.constant dense<0.000000e+00> : vector<128x128xf32>
      %18 = tpu.matmul %16, %17, %cst_13 {dimension_numbers = #tpu.dot_dimension_numbers<[1], [0], [0], [1], [0, 0, 1, 1], [], []>} : vector<128x128xbf16>, vector<128x128xbf16>, vector<128x128xf32> -> vector<128x128xf32>
      %19 = arith.addf %15, %18 : vector<128x128xf32>
      %c0_14 = arith.constant 0 : index
      %c0_15 = arith.constant 0 : index
      %20 = vector.load %arg6[%c0_14, %c0_15] : memref<128x128xf32, #tpu.memory_space<vmem>>, vector<128x128xf32>
      tpu.vector_store %arg6[%c0_14, %c0_15], %19 {strides = array<i32>} : memref<128x128xf32, #tpu.memory_space<vmem>>, vector<128x128xf32>,
    } else {
    }
    return
  }
  func.func @transform_0(%arg0: i32, %arg1: i32) -> (i32, i32) {
    %c0_i32 = arith.constant 0 : i32
    return %arg0, %arg1 : i32, i32
  }
  func.func @transform_1(%arg0: i32, %arg1: i32) -> (i32, i32) {
    %c0_i32 = arith.constant 0 : i32
    %c0_i32_0 = arith.constant 0 : i32
    %c0_i32_1 = arith.constant 0 : i32
    return %c0_i32, %c0_i32_0 : i32, i32
  }
  func.func @transform_2(%arg0: i32, %arg1: i32) -> (i32, i32) {
    %c0_i32 = arith.constant 0 : i32
    %c0_i32_0 = arith.constant 0 : i32
    return %arg0, %c0_i32 : i32, i32
  }
  func.func @transform_3(%arg0: i32, %arg1: i32) -> (i32, i32) {
    %c0_i32 = arith.constant 0 : i32
    %c0_i32_0 = arith.constant 0 : i32
    %c0_i32_1 = arith.constant 0 : i32
    return %c0_i32, %c0_i32_0 : i32, i32
  }
  func.func @transform_4(%arg0: i32, %arg1: i32) -> (i32, i32) {
    %c0_i32 = arith.constant 0 : i32
    %c0_i32_0 = arith.constant 0 : i32
    return %arg0, %c0_i32 : i32, i32
  }
}

</mosaic_0001>

<bundles_post_ra>
// kernel: basic_block_forward_nhwc.2
= control target key start
LH: loop header
LB: loop body
LE: loop exit
PB: predicated region body
PF: predicated region fallthrough
CT: control target
= control target key end

     0   :  { %s676_s1 = inlined_call_operand.vmem [shape: bf16[128,128], index: 1, kind: input, shape index: {}]   ;;  %s677_s2 = inlined_call_operand.vmem [shape: f32[1,128], index: 2, kind: input, shape index: {}]   ;;  %s678_s3 = inlined_call_operand.vmem [shape: f32[1,128], index: 3, kind: input, shape index: {}]   ;;  %s679_s0 = inlined_call_operand.vmem [shape: bf16[128,128], index: 0, kind: input, shape index: {}]   ;;  %s680_s4 = inlined_call_operand.vmem [shape: bf16[128,128], index: 4, kind: output, shape index: {}]  }
   0x1   :  { %v463_v0 = vld [vmem:[%s676_s1 + $0x38] sm:$0xff]  ;;  %v462_v1 = vld [vmem:[%s676_s1 + $0x30] sm:$0xff]  ;;  %v461_v2 = vld [vmem:[%s676_s1 + $0x28] sm:$0xff] }
   0x2   :  { %150 = vmatpush.bf16.msra.mxu0 %v463_v0  ;;  %511 = vmatpush.bf16.msra.mxu1 %v463_v0  ;;  %v460_v3 = vld [vmem:[%s676_s1 + $0x20] sm:$0xff]  ;;  %v459_v4 = vld [vmem:[%s676_s1 + $0x18] sm:$0xff]  ;;  %v458_v5 = vld [vmem:[%s676_s1 + $0x10] sm:$0xff] }
   0x3   :  { %512 = vmatpush.bf16.msra.mxu2 %v463_v0  ;;  %513 = vmatpush.bf16.msra.mxu3 %v463_v0  ;;  %v457_v6 = vld [vmem:[%s676_s1 + $0x8] sm:$0xff]  ;;  %v456_v7 = vld [vmem:[%s676_s1] sm:$0xff]  ;;  %v450_v9 = vld [vmem:[%s679_s0 + $0x10] sm:$0xff] }
   0x4   :  { %v448_v8 = vld [vmem:[%s679_s0] sm:$0xff]  ;;  %v454_v11 = vld [vmem:[%s679_s0 + $0x30] sm:$0xff]  ;;  %v449_v12 = vld [vmem:[%s679_s0 + $0x8] sm:$0xff] }
   0x5   :  { %v452_v10 = vld [vmem:[%s679_s0 + $0x20] sm:$0xff]  ;;  %v451_v13 = vld [vmem:[%s679_s0 + $0x18] sm:$0xff]  ;;  %v453_v14 = vld [vmem:[%s679_s0 + $0x28] sm:$0xff] }
   0x6   :  { %151 = vmatpush.bf16.msra.mxu0 %v462_v1  ;;  %514 = vmatpush.bf16.msra.mxu1 %v462_v1  ;;  %v455_v15 = vld [vmem:[%s679_s0 + $0x38] sm:$0xff]  ;;  %v613_v18 = vld [vmem:[%s677_s2] ss:$0 sm:$0xff] }
   0x7   :  { %515 = vmatpush.bf16.msra.mxu2 %v462_v1  ;;  %516 = vmatpush.bf16.msra.mxu3 %v462_v1  ;;  %v619_v20 = vld [vmem:[%s678_s3] ss:$0 sm:$0xff] }
   0xa   :  { %152 = vmatpush.bf16.msra.mxu0 %v461_v2  ;;  %517 = vmatpush.bf16.msra.mxu1 %v461_v2 }
   0xb   :  { %518 = vmatpush.bf16.msra.mxu2 %v461_v2  ;;  %519 = vmatpush.bf16.msra.mxu3 %v461_v2 }
   0xe   :  { %153 = vmatpush.bf16.msra.mxu0 %v460_v3  ;;  %520 = vmatpush.bf16.msra.mxu1 %v460_v3 }
   0xf   :  { %521 = vmatpush.bf16.msra.mxu2 %v460_v3  ;;  %522 = vmatpush.bf16.msra.mxu3 %v460_v3 }
  0x12   :  { %154 = vmatpush.bf16.msra.mxu0 %v459_v4  ;;  %523 = vmatpush.bf16.msra.mxu1 %v459_v4 }
  0x13   :  { %524 = vmatpush.bf16.msra.mxu2 %v459_v4  ;;  %525 = vmatpush.bf16.msra.mxu3 %v459_v4 }
  0x16   :  { %155 = vmatpush.bf16.msra.mxu0 %v458_v5  ;;  %526 = vmatpush.bf16.msra.mxu1 %v458_v5 }
  0x17   :  { %527 = vmatpush.bf16.msra.mxu2 %v458_v5  ;;  %528 = vmatpush.bf16.msra.mxu3 %v458_v5 }
  0x1a   :  { %156 = vmatpush.bf16.msra.mxu0 %v457_v6  ;;  %529 = vmatpush.bf16.msra.mxu1 %v457_v6 }
  0x1b   :  { %530 = vmatpush.bf16.msra.mxu2 %v457_v6  ;;  %531 = vmatpush.bf16.msra.mxu3 %v457_v6 }
  0x1e   :  { %157 = vmatpush.bf16.msra.mxu0 %v456_v7  ;;  %532 = vmatpush.bf16.msra.mxu1 %v456_v7 }
  0x1f   :  { %533 = vmatpush.bf16.msra.mxu2 %v456_v7  ;;  %534 = vmatpush.bf16.msra.mxu3 %v456_v7 }
  0x21   :  { %158 = vmatmul.bf16.vlgmr.msra.gmra.mxu0 %v448_v8  ;;  %168 = vmatmul.bf16.vlgmr.msra.gmra.mxu1 %v450_v9 }
  0x22   :  { %178 = vmatmul.bf16.vlgmr.msra.gmra.mxu2 %v452_v10  ;;  %188 = vmatmul.bf16.vlgmr.msra.gmra.mxu3 %v454_v11 }
  0x31   :  { %163 = vmatmul.bf16.gmra.mxu0 %v449_v12  ;;  %173 = vmatmul.bf16.gmra.mxu1 %v451_v13 }
  0x32   :  { %183 = vmatmul.bf16.gmra.mxu2 %v453_v14  ;;  %193 = vmatmul.bf16.gmra.mxu3 %v455_v15 }
  0x9e   :  { %v159_v16 = vpop.f32.mrf.mxu0  ;;  %v169_v17 = vpop.f32.mrf.mxu1 }
  0x9f   :  { %v294_v19 = vmul.f32 %v613_v18, %v159_v16  ;;  %v298_v21 = vmul.f32 %v613_v18, %v169_v17 }
  0xa1   :  { %v314_v26 = vadd.f32 %v619_v20, %v294_v19  ;;  %v318_v27 = vadd.f32 %v619_v20, %v298_v21 }
  0xa3   :  { %v330_v34 = vmax.f32 %v314_v26, 0.0  ;;  %v334_v35 = vmax.f32 %v318_v27, 0.0 }
  0xa5   :  { %v179_v22 = vpop.f32.mrf.mxu2  ;;  %v189_v23 = vpop.f32.mrf.mxu3 }
  0xa6   :  { %v161_v24 = vpop.f32.mrf.mxu0  ;;  %v171_v25 = vpop.f32.mrf.mxu1  ;;  %v302_v32 = vmul.f32 %v613_v18, %v179_v22  ;;  %v306_v33 = vmul.f32 %v613_v18, %v189_v23 }
  0xa7   :  { %v295_v28 = vmul.f32 %v613_v18, %v161_v24  ;;  %v299_v29 = vmul.f32 %v613_v18, %v171_v25 }
  0xa8   :  { %v322_v42 = vadd.f32 %v619_v20, %v302_v32  ;;  %v326_v43 = vadd.f32 %v619_v20, %v306_v33 }
  0xa9   :  { %v315_v30 = vadd.f32 %v619_v20, %v295_v28  ;;  %v319_v31 = vadd.f32 %v619_v20, %v299_v29 }
  0xaa   :  { %v338_v50 = vmax.f32 %v322_v42, 0.0  ;;  %v342_v51 = vmax.f32 %v326_v43, 0.0 }
  0xab   :  { %v331_v36 = vmax.f32 %v315_v30, 0.0  ;;  %v335_v37 = vmax.f32 %v319_v31, 0.0 }
  0xad   :  { %v467_v38 = vpack.c.bf16 %v331_v36, %v330_v34  ;;  %v477_v39 = vpack.c.bf16 %v335_v37, %v334_v35  ;;  %v181_v40 = vpop.f32.mrf.mxu2  ;;  %v191_v41 = vpop.f32.mrf.mxu3 }
  0xae   :  { %v303_v44 = vmul.f32 %v613_v18, %v181_v40  ;;  %v307_v45 = vmul.f32 %v613_v18, %v191_v41  ;;  %v164_v46 = vpop.f32.mrf.mxu0  ;;  %v174_v47 = vpop.f32.mrf.mxu1 }
  0xaf   :  { %468 = vst [vmem:[%s680_s4] sm:$0xff] %v467_v38   ;;  %v296_v54 = vmul.f32 %v613_v18, %v164_v46  ;;  %v300_v55 = vmul.f32 %v613_v18, %v174_v47 }
  0xb0   :  { %505 = vst [vmem:[%s680_s4 + $0x10] sm:$0xff] %v477_v39   ;;  %v323_v48 = vadd.f32 %v619_v20, %v303_v44  ;;  %v327_v49 = vadd.f32 %v619_v20, %v307_v45 }
  0xb1   :  { %v316_v62 = vadd.f32 %v619_v20, %v296_v54  ;;  %v320_v63 = vadd.f32 %v619_v20, %v300_v55 }
  0xb2   :  { %v339_v52 = vmax.f32 %v323_v48, 0.0  ;;  %v343_v53 = vmax.f32 %v327_v49, 0.0 }
  0xb3   :  { %v332_v6 = vmax.f32 %v316_v62, 0.0  ;;  %v336_v7 = vmax.f32 %v320_v63, 0.0 }
  0xb4   :  { %v487_v56 = vpack.c.bf16 %v339_v52, %v338_v50  ;;  %v497_v57 = vpack.c.bf16 %v343_v53, %v342_v51 }
  0xb5   :  { %v184_v58 = vpop.f32.mrf.mxu2  ;;  %v194_v59 = vpop.f32.mrf.mxu3 }
  0xb6   :  { %507 = vst [vmem:[%s680_s4 + $0x20] sm:$0xff] %v487_v56   ;;  %v166_v60 = vpop.f32.mrf.mxu0  ;;  %v176_v61 = vpop.f32.mrf.mxu1  ;;  %v304_v4 = vmul.f32 %v613_v18, %v184_v58  ;;  %v308_v5 = vmul.f32 %v613_v18, %v194_v59 }
  0xb7   :  { %509 = vst [vmem:[%s680_s4 + $0x30] sm:$0xff] %v497_v57   ;;  %v297_v0 = vmul.f32 %v613_v18, %v166_v60  ;;  %v301_v1 = vmul.f32 %v613_v18, %v176_v61 }
  0xb8   :  { %v324_v14 = vadd.f32 %v619_v20, %v304_v4  ;;  %v328_v15 = vadd.f32 %v619_v20, %v308_v5 }
  0xb9   :  { %v317_v2 = vadd.f32 %v619_v20, %v297_v0  ;;  %v321_v3 = vadd.f32 %v619_v20, %v301_v1 }
  0xba   :  { %v340_v22 = vmax.f32 %v324_v14, 0.0  ;;  %v344_v23 = vmax.f32 %v328_v15, 0.0 }
  0xbb   :  { %v333_v8 = vmax.f32 %v317_v2, 0.0  ;;  %v337_v9 = vmax.f32 %v321_v3, 0.0 }
  0xbd   :  { %v472_v10 = vpack.c.bf16 %v333_v8, %v332_v6  ;;  %v482_v11 = vpack.c.bf16 %v337_v9, %v336_v7  ;;  %v186_v12 = vpop.f32.mrf.mxu2  ;;  %v196_v13 = vpop.f32.mrf.mxu3 }
  0xbe   :  { %v305_v16 = vmul.f32 %v613_v18, %v186_v12  ;;  %v309_v17 = vmul.f32 %v613_v18, %v196_v13 }
  0xbf   :  { %504 = vst [vmem:[%s680_s4 + $0x8] sm:$0xff] %v472_v10  }
  0xc0   :  { %506 = vst [vmem:[%s680_s4 + $0x18] sm:$0xff] %v482_v11   ;;  %v325_v19 = vadd.f32 %v619_v20, %v305_v16  ;;  %v329_v21 = vadd.f32 %v619_v20, %v309_v17 }
  0xc2   :  { %v341_v24 = vmax.f32 %v325_v19, 0.0  ;;  %v345_v25 = vmax.f32 %v329_v21, 0.0 }
  0xc4   :  { %v492_v26 = vpack.c.bf16 %v341_v24, %v340_v22  ;;  %v502_v27 = vpack.c.bf16 %v345_v25, %v344_v23 }
  0xc6   :  { %508 = vst [vmem:[%s680_s4 + $0x28] sm:$0xff] %v492_v26  }
  0xc7   :  { %510 = vst [vmem:[%s680_s4 + $0x38] sm:$0xff] %v502_v27  }

// kernel: basic_block_forward_nhwc.3
= control target key start
LH: loop header
LB: loop body
LE: loop exit
PB: predicated region body
PF: predicated region fallthrough
CT: control target
= control target key end

     0   :  { %s852_s0 = inlined_call_operand.vmem [shape: bf16[128,128], index: 0, kind: input, shape index: {}]   ;;  %s853_s1 = inlined_call_operand.vmem [shape: bf16[128,128], index: 1, kind: input, shape index: {}]   ;;  %s854_s2 = inlined_call_operand.vmem [shape: bf16[128,128], index: 2, kind: input, shape index: {}]   ;;  %s855_s3 = inlined_call_operand.vmem [shape: bf16[128,128], index: 3, kind: input, shape index: {}]   ;;  %s856_s4 = inlined_call_operand.hbm [shape: f32[128,128], index: 4, kind: output, shape index: {}]  }
   0x1   :  { %v663_v0 = vld [vmem:[%s853_s1 + $0x38] sm:$0xff]  ;;  %v662_v2 = vld [vmem:[%s853_s1 + $0x30] sm:$0xff]  ;;  %v661_v4 = vld [vmem:[%s853_s1 + $0x28] sm:$0xff] }
   0x2   :  { %v679_v1 = vld [vmem:[%s855_s3 + $0x38] sm:$0xff]  ;;  %151 = vmatpush.bf16.msra.mxu0 %v663_v0  ;;  %680 = vmatpush.bf16.msra.mxu2 %v663_v0  ;;  %v678_v3 = vld [vmem:[%s855_s3 + $0x30] sm:$0xff]  ;;  %v677_v5 = vld [vmem:[%s855_s3 + $0x28] sm:$0xff] }
   0x3   :  { %419 = vmatpush.bf16.msra.mxu1 %v679_v1  ;;  %688 = vmatpush.bf16.msra.mxu3 %v679_v1 }
   0x6   :  { %152 = vmatpush.bf16.msra.mxu0 %v662_v2  ;;  %681 = vmatpush.bf16.msra.mxu2 %v662_v2 }
   0x7   :  { %420 = vmatpush.bf16.msra.mxu1 %v678_v3  ;;  %689 = vmatpush.bf16.msra.mxu3 %v678_v3 }
   0x8   :  { %9 = vsyncpa [#allocation4], 0  ;;  %v660_v6 = vld [vmem:[%s853_s1 + $0x20] sm:$0xff]  ;;  %v659_v8 = vld [vmem:[%s853_s1 + $0x18] sm:$0xff]  ;;  %s726_s27 = smov 128  }
   0x9   :  { %v676_v7 = vld [vmem:[%s855_s3 + $0x20] sm:$0xff]  ;;  %v675_v9 = vld [vmem:[%s855_s3 + $0x18] sm:$0xff]  ;;  %v658_v10 = vld [vmem:[%s853_s1 + $0x10] sm:$0xff] }
   0xa   :  { %153 = vmatpush.bf16.msra.mxu0 %v661_v4  ;;  %682 = vmatpush.bf16.msra.mxu2 %v661_v4  ;;  %v674_v11 = vld [vmem:[%s855_s3 + $0x10] sm:$0xff]  ;;  %v657_v12 = vld [vmem:[%s853_s1 + $0x8] sm:$0xff]  ;;  %v656_v14 = vld [vmem:[%s853_s1] sm:$0xff]  ;;  %s506_s1 = sshll.u32 %s856_s4, 4  ;;  %s507_s1 = int_to_ptr.hbm [resolvable:$true] %s506_s1 }
   0xb   :  { %421 = vmatpush.bf16.msra.mxu1 %v677_v5  ;;  %690 = vmatpush.bf16.msra.mxu3 %v677_v5  ;;  %v673_v13 = vld [vmem:[%s855_s3 + $0x8] sm:$0xff]  ;;  %v672_v15 = vld [vmem:[%s855_s3] sm:$0xff]  ;;  %v650_v24 = vld [vmem:[%s852_s0 + $0x10] sm:$0xff]  ;;  %s727_s3 = smov 8  }
   0xc   :  { %v648_v16 = vld [vmem:[%s852_s0] sm:$0xff]  ;;  %v649_v20 = vld [vmem:[%s852_s0 + $0x8] sm:$0xff]  ;;  %v654_v25 = vld [vmem:[%s852_s0 + $0x30] sm:$0xff] }
   0xd   :  { %v652_v17 = vld [vmem:[%s852_s0 + $0x20] sm:$0xff]  ;;  %v653_v21 = vld [vmem:[%s852_s0 + $0x28] sm:$0xff]  ;;  %v666_v26 = vld [vmem:[%s854_s2 + $0x10] sm:$0xff] }
   0xe   :  { %154 = vmatpush.bf16.msra.mxu0 %v660_v6  ;;  %683 = vmatpush.bf16.msra.mxu2 %v660_v6  ;;  %v664_v18 = vld [vmem:[%s854_s2] sm:$0xff]  ;;  %v665_v22 = vld [vmem:[%s854_s2 + $0x8] sm:$0xff]  ;;  %v670_v27 = vld [vmem:[%s854_s2 + $0x30] sm:$0xff] }
   0xf   :  { %422 = vmatpush.bf16.msra.mxu1 %v676_v7  ;;  %691 = vmatpush.bf16.msra.mxu3 %v676_v7  ;;  %v668_v19 = vld [vmem:[%s854_s2 + $0x20] sm:$0xff]  ;;  %v669_v23 = vld [vmem:[%s854_s2 + $0x28] sm:$0xff]  ;;  %v651_v28 = vld [vmem:[%s852_s0 + $0x18] sm:$0xff] }
  0x10   :  { %v655_v29 = vld [vmem:[%s852_s0 + $0x38] sm:$0xff]  ;;  %s725_s0 = smov [#allocation3]  }
  0x11   :  { %v667_v30 = vld [vmem:[%s854_s2 + $0x18] sm:$0xff] }
  0x12   :  { %155 = vmatpush.bf16.msra.mxu0 %v659_v8  ;;  %684 = vmatpush.bf16.msra.mxu2 %v659_v8  ;;  %v671_v31 = vld [vmem:[%s854_s2 + $0x38] sm:$0xff]  ;;  %s504_s2 = sshll.u32 %s725_s0, 4  ;;  %s505_s2 = int_to_ptr.vmem [resolvable:$true] %s504_s2 }
  0x13   :  { %423 = vmatpush.bf16.msra.mxu1 %v675_v9  ;;  %692 = vmatpush.bf16.msra.mxu3 %v675_v9 }
  0x16   :  { %156 = vmatpush.bf16.msra.mxu0 %v658_v10  ;;  %685 = vmatpush.bf16.msra.mxu2 %v658_v10 }
  0x17   :  { %424 = vmatpush.bf16.msra.mxu1 %v674_v11  ;;  %693 = vmatpush.bf16.msra.mxu3 %v674_v11 }
  0x1a   :  { %157 = vmatpush.bf16.msra.mxu0 %v657_v12  ;;  %686 = vmatpush.bf16.msra.mxu2 %v657_v12 }
  0x1b   :  { %425 = vmatpush.bf16.msra.mxu1 %v673_v13  ;;  %694 = vmatpush.bf16.msra.mxu3 %v673_v13 }
  0x1e   :  { %158 = vmatpush.bf16.msra.mxu0 %v656_v14  ;;  %687 = vmatpush.bf16.msra.mxu2 %v656_v14 }
  0x1f   :  { %426 = vmatpush.bf16.msra.mxu1 %v672_v15  ;;  %695 = vmatpush.bf16.msra.mxu3 %v672_v15 }
  0x21   :  { %159 = vmatmul.bf16.vlgmr.msra.gmra.mxu0 %v648_v16  ;;  %179 = vmatmul.bf16.vlgmr.msra.gmra.mxu2 %v652_v17 }
  0x22   :  { %427 = vmatmul.bf16.vlgmr.msra.gmra.mxu1 %v664_v18  ;;  %447 = vmatmul.bf16.vlgmr.msra.gmra.mxu3 %v668_v19 }
  0x31   :  { %164 = vmatmul.bf16.gmra.mxu0 %v649_v20  ;;  %184 = vmatmul.bf16.gmra.mxu2 %v653_v21 }
  0x32   :  { %432 = vmatmul.bf16.gmra.mxu1 %v665_v22  ;;  %452 = vmatmul.bf16.gmra.mxu3 %v669_v23 }
  0x41   :  { %169 = vmatmul.bf16.gmra.mxu0 %v650_v24  ;;  %189 = vmatmul.bf16.gmra.mxu2 %v654_v25 }
  0x42   :  { %437 = vmatmul.bf16.gmra.mxu1 %v666_v26  ;;  %457 = vmatmul.bf16.gmra.mxu3 %v670_v27 }
  0x51   :  { %174 = vmatmul.bf16.gmra.mxu0 %v651_v28  ;;  %194 = vmatmul.bf16.gmra.mxu2 %v655_v29 }
  0x52   :  { %442 = vmatmul.bf16.gmra.mxu1 %v667_v30  ;;  %462 = vmatmul.bf16.gmra.mxu3 %v671_v31 }
  0x9e   :  { %v160_v32 = vpop.f32.mrf.mxu0 }
  0x9f   :  { %v428_v33 = vpop.f32.mrf.mxu1 }
  0xa0   :  { %v468_v34 = vadd.f32 %v428_v33, %v160_v32 }
  0xa2   :  { %484 = vst [vmem:[#allocation3] sm:$0xff] %v468_v34 }
  0xa4   :  { %v180_v35 = vpop.f32.mrf.mxu2 }
  0xa5   :  { %v448_v36 = vpop.f32.mrf.mxu3 }
  0xa6   :  { %v476_v37 = vadd.f32 %v448_v36, %v180_v35  ;;  %v162_v38 = vpop.f32.mrf.mxu0 }
  0xa7   :  { %v430_v39 = vpop.f32.mrf.mxu1 }
  0xa8   :  { %492 = vst [vmem:[#allocation3 + $0x40] sm:$0xff] %v476_v37  ;;  %v469_v40 = vadd.f32 %v430_v39, %v162_v38 }
  0xaa   :  { %485 = vst [vmem:[#allocation3 + $0x8] sm:$0xff] %v469_v40 }
  0xac   :  { %v182_v41 = vpop.f32.mrf.mxu2 }
  0xad   :  { %v450_v42 = vpop.f32.mrf.mxu3 }
  0xae   :  { %v477_v43 = vadd.f32 %v450_v42, %v182_v41  ;;  %v165_v44 = vpop.f32.mrf.mxu0 }
  0xaf   :  { %v433_v45 = vpop.f32.mrf.mxu1 }
  0xb0   :  { %493 = vst [vmem:[#allocation3 + $0x48] sm:$0xff] %v477_v43  ;;  %v470_v46 = vadd.f32 %v433_v45, %v165_v44 }
  0xb2   :  { %486 = vst [vmem:[#allocation3 + $0x10] sm:$0xff] %v470_v46 }
  0xb4   :  { %v185_v47 = vpop.f32.mrf.mxu2 }
  0xb5   :  { %v453_v48 = vpop.f32.mrf.mxu3 }
  0xb6   :  { %v478_v49 = vadd.f32 %v453_v48, %v185_v47  ;;  %v167_v50 = vpop.f32.mrf.mxu0 }
  0xb7   :  { %v435_v51 = vpop.f32.mrf.mxu1 }
  0xb8   :  { %494 = vst [vmem:[#allocation3 + $0x50] sm:$0xff] %v478_v49  ;;  %v471_v52 = vadd.f32 %v435_v51, %v167_v50 }
  0xba   :  { %487 = vst [vmem:[#allocation3 + $0x18] sm:$0xff] %v471_v52 }
  0xbc   :  { %v187_v53 = vpop.f32.mrf.mxu2 }
  0xbd   :  { %v455_v54 = vpop.f32.mrf.mxu3 }
  0xbe   :  { %v479_v55 = vadd.f32 %v455_v54, %v187_v53  ;;  %v170_v56 = vpop.f32.mrf.mxu0 }
  0xbf   :  { %v438_v57 = vpop.f32.mrf.mxu1 }
  0xc0   :  { %495 = vst [vmem:[#allocation3 + $0x58] sm:$0xff] %v479_v55  ;;  %v472_v58 = vadd.f32 %v438_v57, %v170_v56 }
  0xc2   :  { %488 = vst [vmem:[#allocation3 + $0x20] sm:$0xff] %v472_v58 }
  0xc4   :  { %v190_v59 = vpop.f32.mrf.mxu2 }
  0xc5   :  { %v458_v60 = vpop.f32.mrf.mxu3 }
  0xc6   :  { %v480_v61 = vadd.f32 %v458_v60, %v190_v59  ;;  %v172_v62 = vpop.f32.mrf.mxu0 }
  0xc7   :  { %v440_v63 = vpop.f32.mrf.mxu1 }
  0xc8   :  { %496 = vst [vmem:[#allocation3 + $0x60] sm:$0xff] %v480_v61  ;;  %v473_v0 = vadd.f32 %v440_v63, %v172_v62 }
  0xca   :  { %489 = vst [vmem:[#allocation3 + $0x28] sm:$0xff] %v473_v0 }
  0xcc   :  { %v192_v1 = vpop.f32.mrf.mxu2 }
  0xcd   :  { %v460_v2 = vpop.f32.mrf.mxu3 }
  0xce   :  { %v481_v3 = vadd.f32 %v460_v2, %v192_v1  ;;  %v175_v4 = vpop.f32.mrf.mxu0 }
  0xcf   :  { %v443_v5 = vpop.f32.mrf.mxu1 }
  0xd0   :  { %497 = vst [vmem:[#allocation3 + $0x68] sm:$0xff] %v481_v3  ;;  %v474_v6 = vadd.f32 %v443_v5, %v175_v4 }
  0xd2   :  { %490 = vst [vmem:[#allocation3 + $0x30] sm:$0xff] %v474_v6 }
  0xd4   :  { %v195_v7 = vpop.f32.mrf.mxu2 }
  0xd5   :  { %v463_v8 = vpop.f32.mrf.mxu3 }
  0xd6   :  { %v482_v9 = vadd.f32 %v463_v8, %v195_v7  ;;  %v177_v10 = vpop.f32.mrf.mxu0 }
  0xd7   :  { %v445_v11 = vpop.f32.mrf.mxu1 }
  0xd8   :  { %498 = vst [vmem:[#allocation3 + $0x70] sm:$0xff] %v482_v9  ;;  %v475_v12 = vadd.f32 %v445_v11, %v177_v10 }
  0xda   :  { %491 = vst [vmem:[#allocation3 + $0x38] sm:$0xff] %v475_v12 }
  0xdc   :  { %v197_v13 = vpop.f32.mrf.mxu2 }
  0xdd   :  { %v465_v14 = vpop.f32.mrf.mxu3 }
  0xde   :  { %v483_v15 = vadd.f32 %v465_v14, %v197_v13 }
  0xe0   :  { %499 = vst [vmem:[#allocation3 + $0x78] sm:$0xff] %v483_v15 }
  0xe1   :  { %512 = dma.vmem_to_hbm [thread:$0]  %s505_s2, 2048, %s507_s1, [#allocation4], %s726_s27, %s726_s27, %s727_s3  }
  0xe2   :  { %723 = dma.done.wait [#allocation4], 2048  }
  0xe3   :  { %724 = vsyncadd [#allocation4], 4294965248 }
  0xe4   :  { %517 = vsyncpa [#allocation4], 1 }

</bundles_post_ra>
